<compile_context>
chip_gen: v7x
topology: tpu7x:2x2x1
jax: 0.10.0
libtpu: 0.0.40
codegen_flags: <defaults>
</compile_context>

<pallas_src>
from functools import partial

import jax
import jax.numpy as jnp
from jax.experimental import pallas as pl
from jax.experimental.pallas import tpu as pltpu


def skip_conv_kernel(x_ref, w_ref, mask_ref, o_ref, im2col_ref, *, K, pad, W):
    """im2col + single MXU matmul + residual add; one batch block per step.

    x_ref     : (Nb, Cin, M)       input block, spatial flattened on lanes
    w_ref     : (Cout, K*K*Cin)    resident im2col weight matrix
    mask_ref  : (K*K, 1, M)        resident 0/1 'same'-padding validity masks
    o_ref     : (Nb, Cout, M)      conv(x) + x
    im2col_ref: (K*K*Cin, M)       VMEM scratch for the stacked operand
    """
    Nb, Cin, M = x_ref.shape
    w = w_ref[...]                                    # (Cout, K*K*Cin)

    for n in range(Nb):                               # Nb is small & static
        xn = x_ref[n]                                 # (Cin, M)

        # Build the (K*K*Cin, M) im2col operand: each tap is a static lane
        # rotation of the in-register block (XLU), masked for 'same' zero
        # padding, then stored full-lane-width at a static sublane offset.
        for kh in range(K):
            for kw in range(K):
                t = kh * K + kw
                off = (kh - pad) * W + (kw - pad)     # flat spatial shift
                if off == 0:
                    piece = xn                        # centre tap: no shift/mask
                else:
                    piece = pltpu.roll(xn, (-off) % M, axis=1) * mask_ref[t]
                im2col_ref[t * Cin:(t + 1) * Cin, :] = piece

        # Single (Cout, K*K*Cin) @ (K*K*Cin, M) matmul, f32 accumulation.
        acc = jnp.dot(w, im2col_ref[...], preferred_element_type=jnp.float32)
        o_ref[n] = (acc + xn.astype(jnp.float32)).astype(o_ref.dtype)


def _pick_batch_block(N, Cin):
    """Batch elements per grid step.

    Fill the 8 f32 sublanes (Nb*Cin >= 8) to amortize per-step pipeline
    overhead, but keep >= 2 'parallel' grid steps on dual-TensorCore chips
    (v7x) so both cores get work.
    """
    nb = max(1, min(N, 8 // max(1, Cin)))
    try:
        dual_core = "v7" in jax.devices()[0].device_kind.lower()
    except Exception:
        dual_core = False
    if dual_core and N >= 2:
        nb = max(1, min(nb, N // 2))
    while N % nb:
        nb -= 1
    return nb


def skip_convolution(x_nchw, weight_oihw, padding, batch_block=None):
    """Pallas implementation of SkipConvolution.forward (NCHW in / NCHW out)."""
    N, Cin, H, W = x_nchw.shape
    Cout, Cin_w, KH, KW = weight_oihw.shape
    # The module's forward (conv(x) + x) only shape-checks for these configs;
    # fail loudly instead of producing a mismatched residual add.
    assert Cin_w == Cin, "weight / input channel mismatch"
    assert Cout == Cin, "residual add requires out_planes == in_planes"
    assert KH == KW and KH % 2 == 1, "square, odd kernel expected"
    assert padding == KH // 2, "residual add requires 'same' padding (k//2)"
    K = KH
    M = H * W

    Nb = batch_block if batch_block is not None else _pick_batch_block(N, Cin)
    assert N % Nb == 0

    # Metadata-only view (NCHW is channel-major and contiguous).
    x_flat = x_nchw.reshape(N, Cin, M)

    # im2col weight matrix: column index = (kh*K + kw)*Cin + ci.
    w2d = jnp.transpose(weight_oihw, (0, 2, 3, 1)).reshape(Cout, K * K * Cin)

    # Per-tap validity masks for 'same' zero padding (row + column bounds),
    # built once here and kept resident in VMEM via a constant index_map.
    rows = jnp.arange(M, dtype=jnp.int32) // W
    cols = jnp.arange(M, dtype=jnp.int32) % W
    tap_masks = []
    for kh in range(K):
        for kw in range(K):
            dh, dw = kh - padding, kw - padding
            valid = ((rows + dh >= 0) & (rows + dh < H) &
                     (cols + dw >= 0) & (cols + dw < W))
            tap_masks.append(valid)
    masks = jnp.stack(tap_masks).astype(x_nchw.dtype).reshape(K * K, 1, M)

    out_flat = pl.pallas_call(
        partial(skip_conv_kernel, K=K, pad=padding, W=W),
        out_shape=jax.ShapeDtypeStruct((N, Cout, M), x_nchw.dtype),
        grid=(N // Nb,),
        in_specs=[
            pl.BlockSpec((Nb, Cin, M), lambda n: (n, 0, 0)),
            # Constant index maps -> weights / masks stay resident in VMEM.
            pl.BlockSpec((Cout, K * K * Cin), lambda n: (0, 0)),
            pl.BlockSpec((K * K, 1, M), lambda n: (0, 0, 0)),
        ],
        out_specs=pl.BlockSpec((Nb, Cout, M), lambda n: (n, 0, 0)),
        scratch_shapes=[pltpu.VMEM((K * K * Cin, M), x_nchw.dtype)],
        compiler_params=pltpu.CompilerParams(
            dimension_semantics=("parallel",)),
    )(x_flat, w2d, masks)

    return out_flat.reshape(N, Cout, H, W)


if __name__ == "__main__":
    # Module config: in_planes = out_planes = 4, kernel = 3, padding = 1
    # (padding = kernel // 2 so the residual add is shape-compatible).
    N, C, H, W = 2, 4, 16, 16
    KH = KW = 3
    PAD = 1

    key = jax.random.PRNGKey(0)
    kx, kw_key = jax.random.split(key)
    x = jax.random.normal(kx, (N, C, H, W), dtype=jnp.float32)
    # Deterministic synthetic Conv2d weight, PyTorch layout (Cout, Cin, KH, KW).
    weight = jax.random.normal(kw_key, (C, C, KH, KW), dtype=jnp.float32) * 0.1

    out = skip_convolution(x, weight, PAD)
    out = jax.block_until_ready(out)

    # Pure-JAX reference: conv2d (NCHW / OIHW, 'same' padding) + skip.
    ref = jax.lax.conv_general_dilated(
        x, weight, window_strides=(1, 1),
        padding=[(PAD, PAD), (PAD, PAD)],
        dimension_numbers=("NCHW", "OIHW", "NCHW")) + x

    assert out.shape == ref.shape == (N, C, H, W)
    err = float(jnp.max(jnp.abs(out - ref)))
    assert jnp.allclose(out, ref, atol=2e-4, rtol=2e-4), err
    print("KERNEL_OK")
</pallas_src>

<mosaic_0001>
module attributes {stable_mosaic.version = 11 : i64} {
  func.func @skip_conv_kernel(%arg0: i32, %arg1: memref<2x4x256xf32, #tpu.memory_space<vmem>>, %arg2: memref<4x36xf32, #tpu.memory_space<vmem>>, %arg3: memref<9x1x256xf32, #tpu.memory_space<vmem>>, %arg4: memref<2x4x256xf32, #tpu.memory_space<vmem>>, %arg5: memref<36x256xf32, #tpu.memory_space<vmem>>) attributes {dimension_semantics = [#tpu.dimension_semantics<parallel>], iteration_bounds = array<i64: 1>, scalar_prefetch = 0 : i64, scratch_operands = 1 : i64, tpu.core_type = #tpu.core_type<tc>, window_params = [{transform_indices = @transform_0, window_bounds = array<i64: 2, 4, 256>}, {pipeline_mode = #tpu.pipeline_mode<synchronous>, transform_indices = @transform_1, window_bounds = array<i64: 4, 36>}, {pipeline_mode = #tpu.pipeline_mode<synchronous>, transform_indices = @transform_2, window_bounds = array<i64: 9, 1, 256>}, {transform_indices = @transform_3, window_bounds = array<i64: 2, 4, 256>}]} {
    %c0 = arith.constant 0 : index
    %c0_0 = arith.constant 0 : index
    %0 = vector.load %arg2[%c0, %c0_0] : memref<4x36xf32, #tpu.memory_space<vmem>>, vector<4x36xf32>
    %c0_1 = arith.constant 0 : index
    %c0_2 = arith.constant 0 : index
    %c0_3 = arith.constant 0 : index
    %1 = vector.load %arg1[%c0_1, %c0_2, %c0_3] : memref<2x4x256xf32, #tpu.memory_space<vmem>>, vector<1x4x256xf32>
    %2 = vector.shape_cast %1 : vector<1x4x256xf32> to vector<4x256xf32>
    %c17_i32 = arith.constant 17 : i32
    %3 = tpu.dynamic_rotate %2 by %c17_i32 dim 1 : vector<4x256xf32>, i32 -> vector<4x256xf32>
    %c0_4 = arith.constant 0 : index
    %c0_5 = arith.constant 0 : index
    %c0_6 = arith.constant 0 : index
    %4 = vector.load %arg3[%c0_4, %c0_5, %c0_6] : memref<9x1x256xf32, #tpu.memory_space<vmem>>, vector<1x1x256xf32>
    %5 = vector.shape_cast %4 : vector<1x1x256xf32> to vector<1x256xf32>
    %6 = vector.broadcast %5 : vector<1x256xf32> to vector<4x256xf32>
    %7 = arith.mulf %3, %6 : vector<4x256xf32>
    %c0_7 = arith.constant 0 : index
    %c0_8 = arith.constant 0 : index
    %8 = vector.load %arg5[%c0_7, %c0_8] : memref<36x256xf32, #tpu.memory_space<vmem>>, vector<4x256xf32>
    tpu.vector_store %arg5[%c0_7, %c0_8], %7 {strides = array<i32>} : memref<36x256xf32, #tpu.memory_space<vmem>>, vector<4x256xf32>,
    %c16_i32 = arith.constant 16 : i32
    %9 = tpu.dynamic_rotate %2 by %c16_i32 dim 1 : vector<4x256xf32>, i32 -> vector<4x256xf32>
    %c1 = arith.constant 1 : index
    %c0_9 = arith.constant 0 : index
    %c0_10 = arith.constant 0 : index
    %10 = vector.load %arg3[%c1, %c0_9, %c0_10] : memref<9x1x256xf32, #tpu.memory_space<vmem>>, vector<1x1x256xf32>
    %11 = vector.shape_cast %10 : vector<1x1x256xf32> to vector<1x256xf32>
    %12 = vector.broadcast %11 : vector<1x256xf32> to vector<4x256xf32>
    %13 = arith.mulf %9, %12 : vector<4x256xf32>
    %c4 = arith.constant 4 : index
    %c0_11 = arith.constant 0 : index
    %14 = vector.load %arg5[%c4, %c0_11] : memref<36x256xf32, #tpu.memory_space<vmem>>, vector<4x256xf32>
    tpu.vector_store %arg5[%c4, %c0_11], %13 {strides = array<i32>} : memref<36x256xf32, #tpu.memory_space<vmem>>, vector<4x256xf32>,
    %c15_i32 = arith.constant 15 : i32
    %15 = tpu.dynamic_rotate %2 by %c15_i32 dim 1 : vector<4x256xf32>, i32 -> vector<4x256xf32>
    %c2 = arith.constant 2 : index
    %c0_12 = arith.constant 0 : index
    %c0_13 = arith.constant 0 : index
    %16 = vector.load %arg3[%c2, %c0_12, %c0_13] : memref<9x1x256xf32, #tpu.memory_space<vmem>>, vector<1x1x256xf32>
    %17 = vector.shape_cast %16 : vector<1x1x256xf32> to vector<1x256xf32>
    %18 = vector.broadcast %17 : vector<1x256xf32> to vector<4x256xf32>
    %19 = arith.mulf %15, %18 : vector<4x256xf32>
    %c8 = arith.constant 8 : index
    %c0_14 = arith.constant 0 : index
    %20 = vector.load %arg5[%c8, %c0_14] : memref<36x256xf32, #tpu.memory_space<vmem>>, vector<4x256xf32>
    tpu.vector_store %arg5[%c8, %c0_14], %19 {strides = array<i32>} : memref<36x256xf32, #tpu.memory_space<vmem>>, vector<4x256xf32>,
    %c1_i32 = arith.constant 1 : i32
    %21 = tpu.dynamic_rotate %2 by %c1_i32 dim 1 : vector<4x256xf32>, i32 -> vector<4x256xf32>
    %c3 = arith.constant 3 : index
    %c0_15 = arith.constant 0 : index
    %c0_16 = arith.constant 0 : index
    %22 = vector.load %arg3[%c3, %c0_15, %c0_16] : memref<9x1x256xf32, #tpu.memory_space<vmem>>, vector<1x1x256xf32>
    %23 = vector.shape_cast %22 : vector<1x1x256xf32> to vector<1x256xf32>
    %24 = vector.broadcast %23 : vector<1x256xf32> to vector<4x256xf32>
    %25 = arith.mulf %21, %24 : vector<4x256xf32>
    %c12 = arith.constant 12 : index
    %c0_17 = arith.constant 0 : index
    %26 = vector.load %arg5[%c12, %c0_17] : memref<36x256xf32, #tpu.memory_space<vmem>>, vector<4x256xf32>
    tpu.vector_store %arg5[%c12, %c0_17], %25 {strides = array<i32>} : memref<36x256xf32, #tpu.memory_space<vmem>>, vector<4x256xf32>,
    %c16 = arith.constant 16 : index
    %c0_18 = arith.constant 0 : index
    %27 = vector.load %arg5[%c16, %c0_18] : memref<36x256xf32, #tpu.memory_space<vmem>>, vector<4x256xf32>
    tpu.vector_store %arg5[%c16, %c0_18], %2 {strides = array<i32>} : memref<36x256xf32, #tpu.memory_space<vmem>>, vector<4x256xf32>,
    %c255_i32 = arith.constant 255 : i32
    %28 = tpu.dynamic_rotate %2 by %c255_i32 dim 1 : vector<4x256xf32>, i32 -> vector<4x256xf32>
    %c5 = arith.constant 5 : index
    %c0_19 = arith.constant 0 : index
    %c0_20 = arith.constant 0 : index
    %29 = vector.load %arg3[%c5, %c0_19, %c0_20] : memref<9x1x256xf32, #tpu.memory_space<vmem>>, vector<1x1x256xf32>
    %30 = vector.shape_cast %29 : vector<1x1x256xf32> to vector<1x256xf32>
    %31 = vector.broadcast %30 : vector<1x256xf32> to vector<4x256xf32>
    %32 = arith.mulf %28, %31 : vector<4x256xf32>
    %c20 = arith.constant 20 : index
    %c0_21 = arith.constant 0 : index
    %33 = vector.load %arg5[%c20, %c0_21] : memref<36x256xf32, #tpu.memory_space<vmem>>, vector<4x256xf32>
    tpu.vector_store %arg5[%c20, %c0_21], %32 {strides = array<i32>} : memref<36x256xf32, #tpu.memory_space<vmem>>, vector<4x256xf32>,
    %c241_i32 = arith.constant 241 : i32
    %34 = tpu.dynamic_rotate %2 by %c241_i32 dim 1 : vector<4x256xf32>, i32 -> vector<4x256xf32>
    %c6 = arith.constant 6 : index
    %c0_22 = arith.constant 0 : index
    %c0_23 = arith.constant 0 : index
    %35 = vector.load %arg3[%c6, %c0_22, %c0_23] : memref<9x1x256xf32, #tpu.memory_space<vmem>>, vector<1x1x256xf32>
    %36 = vector.shape_cast %35 : vector<1x1x256xf32> to vector<1x256xf32>
    %37 = vector.broadcast %36 : vector<1x256xf32> to vector<4x256xf32>
    %38 = arith.mulf %34, %37 : vector<4x256xf32>
    %c24 = arith.constant 24 : index
    %c0_24 = arith.constant 0 : index
    %39 = vector.load %arg5[%c24, %c0_24] : memref<36x256xf32, #tpu.memory_space<vmem>>, vector<4x256xf32>
    tpu.vector_store %arg5[%c24, %c0_24], %38 {strides = array<i32>} : memref<36x256xf32, #tpu.memory_space<vmem>>, vector<4x256xf32>,
    %c240_i32 = arith.constant 240 : i32
    %40 = tpu.dynamic_rotate %2 by %c240_i32 dim 1 : vector<4x256xf32>, i32 -> vector<4x256xf32>
    %c7 = arith.constant 7 : index
    %c0_25 = arith.constant 0 : index
    %c0_26 = arith.constant 0 : index
    %41 = vector.load %arg3[%c7, %c0_25, %c0_26] : memref<9x1x256xf32, #tpu.memory_space<vmem>>, vector<1x1x256xf32>
    %42 = vector.shape_cast %41 : vector<1x1x256xf32> to vector<1x256xf32>
    %43 = vector.broadcast %42 : vector<1x256xf32> to vector<4x256xf32>
    %44 = arith.mulf %40, %43 : vector<4x256xf32>
    %c28 = arith.constant 28 : index
    %c0_27 = arith.constant 0 : index
    %45 = vector.load %arg5[%c28, %c0_27] : memref<36x256xf32, #tpu.memory_space<vmem>>, vector<4x256xf32>
    tpu.vector_store %arg5[%c28, %c0_27], %44 {strides = array<i32>} : memref<36x256xf32, #tpu.memory_space<vmem>>, vector<4x256xf32>,
    %c239_i32 = arith.constant 239 : i32
    %46 = tpu.dynamic_rotate %2 by %c239_i32 dim 1 : vector<4x256xf32>, i32 -> vector<4x256xf32>
    %c8_28 = arith.constant 8 : index
    %c0_29 = arith.constant 0 : index
    %c0_30 = arith.constant 0 : index
    %47 = vector.load %arg3[%c8_28, %c0_29, %c0_30] : memref<9x1x256xf32, #tpu.memory_space<vmem>>, vector<1x1x256xf32>
    %48 = vector.shape_cast %47 : vector<1x1x256xf32> to vector<1x256xf32>
    %49 = vector.broadcast %48 : vector<1x256xf32> to vector<4x256xf32>
    %50 = arith.mulf %46, %49 : vector<4x256xf32>
    %c32 = arith.constant 32 : index
    %c0_31 = arith.constant 0 : index
    %51 = vector.load %arg5[%c32, %c0_31] : memref<36x256xf32, #tpu.memory_space<vmem>>, vector<4x256xf32>
    tpu.vector_store %arg5[%c32, %c0_31], %50 {strides = array<i32>} : memref<36x256xf32, #tpu.memory_space<vmem>>, vector<4x256xf32>,
    %c0_32 = arith.constant 0 : index
    %c0_33 = arith.constant 0 : index
    %52 = vector.load %arg5[%c0_32, %c0_33] : memref<36x256xf32, #tpu.memory_space<vmem>>, vector<36x256xf32>
    %cst = arith.constant dense<0.000000e+00> : vector<4x256xf32>
    %53 = tpu.matmul %0, %52, %cst {dimension_numbers = #tpu.dot_dimension_numbers<[1], [0], [0], [1], [0, 0, 1, 1], [], []>} : vector<4x36xf32>, vector<36x256xf32>, vector<4x256xf32> -> vector<4x256xf32>
    %54 = arith.addf %53, %2 : vector<4x256xf32>
    %c0_34 = arith.constant 0 : index
    %c0_35 = arith.constant 0 : index
    %c0_36 = arith.constant 0 : index
    %55 = vector.load %arg4[%c0_34, %c0_35, %c0_36] : memref<2x4x256xf32, #tpu.memory_space<vmem>>, vector<1x4x256xf32>
    %56 = vector.shape_cast %55 : vector<1x4x256xf32> to vector<4x256xf32>
    %57 = vector.shape_cast %54 : vector<4x256xf32> to vector<1x4x256xf32>
    tpu.vector_store %arg4[%c0_34, %c0_35, %c0_36], %57 {strides = array<i32>} : memref<2x4x256xf32, #tpu.memory_space<vmem>>, vector<1x4x256xf32>,
    %c1_37 = arith.constant 1 : index
    %c0_38 = arith.constant 0 : index
    %c0_39 = arith.constant 0 : index
    %58 = vector.load %arg1[%c1_37, %c0_38, %c0_39] : memref<2x4x256xf32, #tpu.memory_space<vmem>>, vector<1x4x256xf32>
    %59 = vector.shape_cast %58 : vector<1x4x256xf32> to vector<4x256xf32>
    %c17_i32_40 = arith.constant 17 : i32
    %60 = tpu.dynamic_rotate %59 by %c17_i32_40 dim 1 : vector<4x256xf32>, i32 -> vector<4x256xf32>
    %c0_41 = arith.constant 0 : index
    %c0_42 = arith.constant 0 : index
    %c0_43 = arith.constant 0 : index
    %61 = vector.load %arg3[%c0_41, %c0_42, %c0_43] : memref<9x1x256xf32, #tpu.memory_space<vmem>>, vector<1x1x256xf32>
    %62 = vector.shape_cast %61 : vector<1x1x256xf32> to vector<1x256xf32>
    %63 = vector.broadcast %62 : vector<1x256xf32> to vector<4x256xf32>
    %64 = arith.mulf %60, %63 : vector<4x256xf32>
    %c0_44 = arith.constant 0 : index
    %c0_45 = arith.constant 0 : index
    %65 = vector.load %arg5[%c0_44, %c0_45] : memref<36x256xf32, #tpu.memory_space<vmem>>, vector<4x256xf32>
    tpu.vector_store %arg5[%c0_44, %c0_45], %64 {strides = array<i32>} : memref<36x256xf32, #tpu.memory_space<vmem>>, vector<4x256xf32>,
    %c16_i32_46 = arith.constant 16 : i32
    %66 = tpu.dynamic_rotate %59 by %c16_i32_46 dim 1 : vector<4x256xf32>, i32 -> vector<4x256xf32>
    %c1_47 = arith.constant 1 : index
    %c0_48 = arith.constant 0 : index
    %c0_49 = arith.constant 0 : index
    %67 = vector.load %arg3[%c1_47, %c0_48, %c0_49] : memref<9x1x256xf32, #tpu.memory_space<vmem>>, vector<1x1x256xf32>
    %68 = vector.shape_cast %67 : vector<1x1x256xf32> to vector<1x256xf32>
    %69 = vector.broadcast %68 : vector<1x256xf32> to vector<4x256xf32>
    %70 = arith.mulf %66, %69 : vector<4x256xf32>
    %c4_50 = arith.constant 4 : index
    %c0_51 = arith.constant 0 : index
    %71 = vector.load %arg5[%c4_50, %c0_51] : memref<36x256xf32, #tpu.memory_space<vmem>>, vector<4x256xf32>
    tpu.vector_store %arg5[%c4_50, %c0_51], %70 {strides = array<i32>} : memref<36x256xf32, #tpu.memory_space<vmem>>, vector<4x256xf32>,
    %c15_i32_52 = arith.constant 15 : i32
    %72 = tpu.dynamic_rotate %59 by %c15_i32_52 dim 1 : vector<4x256xf32>, i32 -> vector<4x256xf32>
    %c2_53 = arith.constant 2 : index
    %c0_54 = arith.constant 0 : index
    %c0_55 = arith.constant 0 : index
    %73 = vector.load %arg3[%c2_53, %c0_54, %c0_55] : memref<9x1x256xf32, #tpu.memory_space<vmem>>, vector<1x1x256xf32>
    %74 = vector.shape_cast %73 : vector<1x1x256xf32> to vector<1x256xf32>
    %75 = vector.broadcast %74 : vector<1x256xf32> to vector<4x256xf32>
    %76 = arith.mulf %72, %75 : vector<4x256xf32>
    %c8_56 = arith.constant 8 : index
    %c0_57 = arith.constant 0 : index
    %77 = vector.load %arg5[%c8_56, %c0_57] : memref<36x256xf32, #tpu.memory_space<vmem>>, vector<4x256xf32>
    tpu.vector_store %arg5[%c8_56, %c0_57], %76 {strides = array<i32>} : memref<36x256xf32, #tpu.memory_space<vmem>>, vector<4x256xf32>,
    %c1_i32_58 = arith.constant 1 : i32
    %78 = tpu.dynamic_rotate %59 by %c1_i32_58 dim 1 : vector<4x256xf32>, i32 -> vector<4x256xf32>
    %c3_59 = arith.constant 3 : index
    %c0_60 = arith.constant 0 : index
    %c0_61 = arith.constant 0 : index
    %79 = vector.load %arg3[%c3_59, %c0_60, %c0_61] : memref<9x1x256xf32, #tpu.memory_space<vmem>>, vector<1x1x256xf32>
    %80 = vector.shape_cast %79 : vector<1x1x256xf32> to vector<1x256xf32>
    %81 = vector.broadcast %80 : vector<1x256xf32> to vector<4x256xf32>
    %82 = arith.mulf %78, %81 : vector<4x256xf32>
    %c12_62 = arith.constant 12 : index
    %c0_63 = arith.constant 0 : index
    %83 = vector.load %arg5[%c12_62, %c0_63] : memref<36x256xf32, #tpu.memory_space<vmem>>, vector<4x256xf32>
    tpu.vector_store %arg5[%c12_62, %c0_63], %82 {strides = array<i32>} : memref<36x256xf32, #tpu.memory_space<vmem>>, vector<4x256xf32>,
    %c16_64 = arith.constant 16 : index
    %c0_65 = arith.constant 0 : index
    %84 = vector.load %arg5[%c16_64, %c0_65] : memref<36x256xf32, #tpu.memory_space<vmem>>, vector<4x256xf32>
    tpu.vector_store %arg5[%c16_64, %c0_65], %59 {strides = array<i32>} : memref<36x256xf32, #tpu.memory_space<vmem>>, vector<4x256xf32>,
    %c255_i32_66 = arith.constant 255 : i32
    %85 = tpu.dynamic_rotate %59 by %c255_i32_66 dim 1 : vector<4x256xf32>, i32 -> vector<4x256xf32>
    %c5_67 = arith.constant 5 : index
    %c0_68 = arith.constant 0 : index
    %c0_69 = arith.constant 0 : index
    %86 = vector.load %arg3[%c5_67, %c0_68, %c0_69] : memref<9x1x256xf32, #tpu.memory_space<vmem>>, vector<1x1x256xf32>
    %87 = vector.shape_cast %86 : vector<1x1x256xf32> to vector<1x256xf32>
    %88 = vector.broadcast %87 : vector<1x256xf32> to vector<4x256xf32>
    %89 = arith.mulf %85, %88 : vector<4x256xf32>
    %c20_70 = arith.constant 20 : index
    %c0_71 = arith.constant 0 : index
    %90 = vector.load %arg5[%c20_70, %c0_71] : memref<36x256xf32, #tpu.memory_space<vmem>>, vector<4x256xf32>
    tpu.vector_store %arg5[%c20_70, %c0_71], %89 {strides = array<i32>} : memref<36x256xf32, #tpu.memory_space<vmem>>, vector<4x256xf32>,
    %c241_i32_72 = arith.constant 241 : i32
    %91 = tpu.dynamic_rotate %59 by %c241_i32_72 dim 1 : vector<4x256xf32>, i32 -> vector<4x256xf32>
    %c6_73 = arith.constant 6 : index
    %c0_74 = arith.constant 0 : index
    %c0_75 = arith.constant 0 : index
    %92 = vector.load %arg3[%c6_73, %c0_74, %c0_75] : memref<9x1x256xf32, #tpu.memory_space<vmem>>, vector<1x1x256xf32>
    %93 = vector.shape_cast %92 : vector<1x1x256xf32> to vector<1x256xf32>
    %94 = vector.broadcast %93 : vector<1x256xf32> to vector<4x256xf32>
    %95 = arith.mulf %91, %94 : vector<4x256xf32>
    %c24_76 = arith.constant 24 : index
    %c0_77 = arith.constant 0 : index
    %96 = vector.load %arg5[%c24_76, %c0_77] : memref<36x256xf32, #tpu.memory_space<vmem>>, vector<4x256xf32>
    tpu.vector_store %arg5[%c24_76, %c0_77], %95 {strides = array<i32>} : memref<36x256xf32, #tpu.memory_space<vmem>>, vector<4x256xf32>,
    %c240_i32_78 = arith.constant 240 : i32
    %97 = tpu.dynamic_rotate %59 by %c240_i32_78 dim 1 : vector<4x256xf32>, i32 -> vector<4x256xf32>
    %c7_79 = arith.constant 7 : index
    %c0_80 = arith.constant 0 : index
    %c0_81 = arith.constant 0 : index
    %98 = vector.load %arg3[%c7_79, %c0_80, %c0_81] : memref<9x1x256xf32, #tpu.memory_space<vmem>>, vector<1x1x256xf32>
    %99 = vector.shape_cast %98 : vector<1x1x256xf32> to vector<1x256xf32>
    %100 = vector.broadcast %99 : vector<1x256xf32> to vector<4x256xf32>
    %101 = arith.mulf %97, %100 : vector<4x256xf32>
    %c28_82 = arith.constant 28 : index
    %c0_83 = arith.constant 0 : index
    %102 = vector.load %arg5[%c28_82, %c0_83] : memref<36x256xf32, #tpu.memory_space<vmem>>, vector<4x256xf32>
    tpu.vector_store %arg5[%c28_82, %c0_83], %101 {strides = array<i32>} : memref<36x256xf32, #tpu.memory_space<vmem>>, vector<4x256xf32>,
    %c239_i32_84 = arith.constant 239 : i32
    %103 = tpu.dynamic_rotate %59 by %c239_i32_84 dim 1 : vector<4x256xf32>, i32 -> vector<4x256xf32>
    %c8_85 = arith.constant 8 : index
    %c0_86 = arith.constant 0 : index
    %c0_87 = arith.constant 0 : index
    %104 = vector.load %arg3[%c8_85, %c0_86, %c0_87] : memref<9x1x256xf32, #tpu.memory_space<vmem>>, vector<1x1x256xf32>
    %105 = vector.shape_cast %104 : vector<1x1x256xf32> to vector<1x256xf32>
    %106 = vector.broadcast %105 : vector<1x256xf32> to vector<4x256xf32>
    %107 = arith.mulf %103, %106 : vector<4x256xf32>
    %c32_88 = arith.constant 32 : index
    %c0_89 = arith.constant 0 : index
    %108 = vector.load %arg5[%c32_88, %c0_89] : memref<36x256xf32, #tpu.memory_space<vmem>>, vector<4x256xf32>
    tpu.vector_store %arg5[%c32_88, %c0_89], %107 {strides = array<i32>} : memref<36x256xf32, #tpu.memory_space<vmem>>, vector<4x256xf32>,
    %c0_90 = arith.constant 0 : index
    %c0_91 = arith.constant 0 : index
    %109 = vector.load %arg5[%c0_90, %c0_91] : memref<36x256xf32, #tpu.memory_space<vmem>>, vector<36x256xf32>
    %cst_92 = arith.constant dense<0.000000e+00> : vector<4x256xf32>
    %110 = tpu.matmul %0, %109, %cst_92 {dimension_numbers = #tpu.dot_dimension_numbers<[1], [0], [0], [1], [0, 0, 1, 1], [], []>} : vector<4x36xf32>, vector<36x256xf32>, vector<4x256xf32> -> vector<4x256xf32>
    %111 = arith.addf %110, %59 : vector<4x256xf32>
    %c1_93 = arith.constant 1 : index
    %c0_94 = arith.constant 0 : index
    %c0_95 = arith.constant 0 : index
    %112 = vector.load %arg4[%c1_93, %c0_94, %c0_95] : memref<2x4x256xf32, #tpu.memory_space<vmem>>, vector<1x4x256xf32>
    %113 = vector.shape_cast %112 : vector<1x4x256xf32> to vector<4x256xf32>
    %114 = vector.shape_cast %111 : vector<4x256xf32> to vector<1x4x256xf32>
    tpu.vector_store %arg4[%c1_93, %c0_94, %c0_95], %114 {strides = array<i32>} : memref<2x4x256xf32, #tpu.memory_space<vmem>>, vector<1x4x256xf32>,
    return
  }
  func.func @transform_0(%arg0: i32) -> (i32, i32, i32) {
    %c0_i32 = arith.constant 0 : i32
    %c0_i32_0 = arith.constant 0 : i32
    %c0_i32_1 = arith.constant 0 : i32
    return %arg0, %c0_i32, %c0_i32_0 : i32, i32, i32
  }
  func.func @transform_1(%arg0: i32) -> (i32, i32) {
    %c0_i32 = arith.constant 0 : i32
    %c0_i32_0 = arith.constant 0 : i32
    %c0_i32_1 = arith.constant 0 : i32
    return %c0_i32, %c0_i32_0 : i32, i32
  }
  func.func @transform_2(%arg0: i32) -> (i32, i32, i32) {
    %c0_i32 = arith.constant 0 : i32
    %c0_i32_0 = arith.constant 0 : i32
    %c0_i32_1 = arith.constant 0 : i32
    %c0_i32_2 = arith.constant 0 : i32
    return %c0_i32, %c0_i32_0, %c0_i32_1 : i32, i32, i32
  }
  func.func @transform_3(%arg0: i32) -> (i32, i32, i32) {
    %c0_i32 = arith.constant 0 : i32
    %c0_i32_0 = arith.constant 0 : i32
    %c0_i32_1 = arith.constant 0 : i32
    return %arg0, %c0_i32, %c0_i32_0 : i32, i32, i32
  }
}

</mosaic_0001>

<bundles_post_ra>
// kernel: tpu_custom_call.1
= control target key start
LH: loop header
LB: loop body
LE: loop exit
PB: predicated region body
PF: predicated region fallthrough
CT: control target
= control target key end

     0   :  { %8 = vsyncpa [#allocation4], 0  ;;  %s1094_s0 = inlined_call_operand.hbm [shape: f32[2,4,256], index: 0, kind: input, shape index: {}]   ;;  %s1095_s1 = inlined_call_operand.hbm [shape: f32[4,36], index: 1, kind: input, shape index: {}]   ;;  %s1096_s2 = inlined_call_operand.hbm [shape: f32[9,1,256], index: 2, kind: input, shape index: {}]   ;;  %s1097_s3 = inlined_call_operand.hbm [shape: f32[2,4,256], index: 3, kind: output, shape index: {}]  }
   0x1   :  { %9 = vsyncpa [#allocation7], 0 }
   0x2   :  { %10 = vsyncpa [#allocation5], 0  ;;  %s828_s12 = smov [#allocation6]   ;;  %s829_s14 = smov [#allocation3]  }
   0x3   :  { %s29_s13 = sshll.u32 %s828_s12, 4  ;;  %s16_s15 = sshll.u32 %s829_s14, 4  ;;  %s30_s13 = int_to_ptr.vmem [resolvable:$true] %s29_s13  ;;  %s865_s15 = int_to_ptr.vmem [resolvable:$true] %s16_s15 }
   0x4   :  { %s734_s18 = scalar_lea.hbm %s1095_s1, 64 }
   0x5   :  { %p735_p0 = scmp.ne.s32.totalorder %s1095_s1, %s734_s18  ;;  %p738_p1 = scmp.lt.u32.totalorder %s734_s18, %s1095_s1 }
   0x7   :  { %p740_p2 = pnand %p738_p1, %p735_p0 }
   0x9   :  { %743 = shalt.err (!%p740_p2)
}
   0xa   :  { %s744_s23 = scalar_lea.vmem %s30_s13, 64  ;;  %p749_p4 = scmp.lt.s32.totalorder %s30_s13, %s30_s13 }
   0xb   :  { %p745_p3 = scmp.ne.s32.totalorder %s30_s13, %s744_s23  ;;  %p750_p5 = scmp.lt.s32.totalorder %s744_s23, %s744_s23 }
   0xd   :  { %p751_p6 = por %p750_p5, %p749_p4 }
   0xf   :  { %p752_p7 = pnand %p751_p6, %p745_p3 }
  0x11   :  { %755 = shalt.err (!%p752_p7)
}
  0x12   :  { %32 = dma.hbm_to_vmem [thread:$0]  %s1095_s1, 64, %s30_s13, [#allocation7]  }
  0x13   :  { %s756_s28 = scalar_lea.hbm %s1094_s0, 256 }
  0x14   :  { %p757_p8 = scmp.ne.s32.totalorder %s1094_s0, %s756_s28  ;;  %p760_p9 = scmp.lt.u32.totalorder %s756_s28, %s1094_s0 }
  0x16   :  { %p762_p10 = pnand %p760_p9, %p757_p8 }
  0x18   :  { %765 = shalt.err (!%p762_p10)
}
  0x19   :  { %s766_s6 = scalar_lea.vmem %s865_s15, 256  ;;  %p771_p12 = scmp.lt.s32.totalorder %s865_s15, %s865_s15 }
  0x1a   :  { %p767_p11 = scmp.ne.s32.totalorder %s865_s15, %s766_s6  ;;  %p772_p13 = scmp.lt.s32.totalorder %s766_s6, %s766_s6 }
  0x1c   :  { %p773_p0 = por %p772_p13, %p771_p12 }
  0x1e   :  { %p774_p1 = pnand %p773_p0, %p767_p11 }
  0x20   :  { %777 = shalt.err (!%p774_p1)
}
  0x21   :  { %s830_s1 = smov 128   ;;  %s831_s7 = smov 8  }
  0x22   :  { %22 = dma.hbm_to_vmem [thread:$0]  %s1094_s0, 256, %s865_s15, [#allocation4], %s830_s1, %s830_s1, %s831_s7  }
  0x23   :  { %s832_s10 = smov [#allocation8]   ;;  %s778_s14 = scalar_lea.hbm %s1096_s2, 288 }
  0x24   :  { %s38_s11 = sshll.u32 %s832_s10, 4  ;;  %p779_p2 = scmp.ne.s32.totalorder %s1096_s2, %s778_s14  ;;  %s39_s11 = int_to_ptr.vmem [resolvable:$true] %s38_s11 }
  0x25   :  { %p782_p3 = scmp.lt.u32.totalorder %s778_s14, %s1096_s2 }
  0x27   :  { %p784_p4 = pnand %p782_p3, %p779_p2 }
  0x29   :  { %787 = shalt.err (!%p784_p4)
}
  0x2a   :  { %s788_s20 = scalar_lea.vmem %s39_s11, 288  ;;  %p793_p6 = scmp.lt.s32.totalorder %s39_s11, %s39_s11 }
  0x2b   :  { %p789_p5 = scmp.ne.s32.totalorder %s39_s11, %s788_s20  ;;  %p794_p7 = scmp.lt.s32.totalorder %s788_s20, %s788_s20 }
  0x2d   :  { %p795_p8 = por %p794_p7, %p793_p6 }
  0x2f   :  { %p796_p9 = pnand %p795_p8, %p789_p5 }
  0x31   :  { %799 = shalt.err (!%p796_p9)
}
  0x32   :  { %s833_s0 = smov 32   ;;  %s834_s15 = smov 2  }
  0x33   :  { %44 = dma.hbm_to_vmem [thread:$0]  %s1096_s2, 288, %s39_s11, [#allocation7], %s833_s0, %s833_s0, %s834_s15  }
  0x34   :  { %822 = dma.done.wait [#allocation4], 256  }
  0x35   :  { %823 = vsyncadd [#allocation4], 4294967040 }
  0x36   :  { %824 = dma.done.wait [#allocation7], 352  }
  0x37   :  { %825 = vsyncadd [#allocation7], 4294966944  ;;  %v911_v0 = vld [vmem:[#allocation3] sm:$0xff]  ;;  %s835_s23 = smov 1   ;;  %s836_s24 = smov 16   ;;  %v931_v2 = vld [vmem:[#allocation3 + $0x8] sm:$0xff]  ;;  %v63_v5 = vlaneseq }
  0x38   :  { %138 = vrot.lane.b32.xlu1 %v911_v0, %s835_s23  ;;  %168 = vst [vmem:[#allocation2 + $0x20] sm:$0xf] %v911_v0  ;;  %84 = vrot.lane.b32.xlu0 %v911_v0, %s836_s24  ;;  %v918_v1 = vcombine.high %v911_v0, %v911_v0  ;;  %s837_s2 = smov 17   ;;  %s838_s25 = smov 15   ;;  %v937_v3 = vcombine.high %v931_v2, %v931_v2  ;;  %v843_v4 = vmov 0.0   ;;  %vm292_vm8 = vcmask 1043456  }
  0x39   :  { %s839_s26 = smov 127   ;;  %s840_s27 = smov 112   ;;  %363 = vmatprep.mubr.f32.mxu0 %v843_v4  ;;  %662 = vmatprep.mubr.f32.mxu1 %v843_v4  ;;  %v71_v6 = vshrl.u32 %v63_v5, 7  ;;  %v957_v7 = vand.u32 127, %v63_v5  ;;  %v146_v10 = vld [vmem:[#allocation8 + $0x6] sm:$0x3] }
  0x3a   :  { %169 = vst [vmem:[#allocation2 + $0x28] sm:$0xf] %v918_v1  ;;  %s841_s28 = smov 113   ;;  %s842_s29 = smov 111   ;;  %v68_v15 = vld [vmem:[#allocation8] sm:$0x3] }
  0x3b   :  { %v959_v8 = vsub.s32 0, %v71_v6  ;;  %v961_v9 = vsub.s32 1, %v71_v6  ;;  %vm142_vm0 = vcmp.lt.s32.totalorder %v957_v7, 1  ;;  %v92_v16 = vld [vmem:[#allocation8 + $0x2] sm:$0x3]  ;;  %vm65_vm1 = vcmp.lt.s32.totalorder %v957_v7, 17 }
  0x3c   :  { %59 = vrot.lane.b32.xlu0 %v911_v0, %s837_s2  ;;  %140 = vrot.lane.b32.xlu1 %v918_v1, %s835_s23  ;;  %vm88_vm2 = vcmp.lt.s32.totalorder %v957_v7, 16  ;;  %v122_v23 = vld [vmem:[#allocation8 + $0x4] sm:$0x3]  ;;  %vm118_vm3 = vcmp.lt.s32.totalorder %v957_v7, 15  ;;  %v178_v42 = vld [vmem:[#allocation8 + $0xa] sm:$0x3] }
  0x3d   :  { %v151_v13 = vrot.slane %v146_v10, %v959_v8  ;;  %v155_v14 = vrot.slane %v146_v10, %v961_v9  ;;  %v73_v21 = vrot.slane %v68_v15, %v959_v8  ;;  %v77_v22 = vrot.slane %v68_v15, %v961_v9  ;;  %v232_v53 = vld [vmem:[#allocation8 + $0xe] sm:$0x3]  ;;  %v208_v62 = vld [vmem:[#allocation8 + $0xc] sm:$0x3]  ;;  %s844_s30 = smov [#allocation9]  }
  0x3e   :  { %v97_v26 = vrot.slane %v92_v16, %v959_v8  ;;  %v101_v27 = vrot.slane %v92_v16, %v961_v9  ;;  %v127_v32 = vrot.slane %v122_v23, %v959_v8  ;;  %v131_v33 = vrot.slane %v122_v23, %v961_v9  ;;  %s680_s4 = sshll.u32 %s844_s30, 4  ;;  %s681_s4 = int_to_ptr.vmem [resolvable:$true] %s680_s4 }
  0x3f   :  { %vm174_vm4 = vcmp.lt.s32.totalorder %v957_v7, 127  ;;  %v183_v51 = vrot.slane %v178_v42, %v959_v8  ;;  %v187_v52 = vrot.slane %v178_v42, %v961_v9  ;;  %vm228_vm5 = vcmp.lt.s32.totalorder %v957_v7, 112  ;;  %s800_s5 = scalar_lea.vmem %s681_s4, 256  ;;  %p805_p11 = scmp.lt.s32.totalorder %s681_s4, %s681_s4 }
  0x40   :  { %61 = vrot.lane.b32.xlu1 %v918_v1, %s837_s2  ;;  %86 = vrot.lane.b32.xlu0 %v918_v1, %s836_s24  ;;  %v237_v60 = vrot.slane %v232_v53, %v959_v8  ;;  %v241_v61 = vrot.slane %v232_v53, %v961_v9  ;;  %vm204_vm6 = vcmp.lt.s32.totalorder %v957_v7, 113  ;;  %v217_v15 = vrot.slane %v208_v62, %v961_v9  ;;  %p801_p10 = scmp.ne.s32.totalorder %s681_s4, %s800_s5  ;;  %p806_p12 = scmp.lt.s32.totalorder %s800_s5, %s800_s5 }
  0x41   :  { %vm258_vm7 = vcmp.lt.s32.totalorder %v957_v7, 111  ;;  %vm288_vm9 = vcmask 293888  }
  0x42   :  { %p807_p13 = por %p806_p12, %p805_p11 }
  0x44   :  { %116 = vrot.lane.b32.xlu1 %v918_v1, %s838_s25  ;;  %114 = vrot.lane.b32.xlu0 %v911_v0, %s838_s25  ;;  %p808_p0 = pnand %p807_p13, %p801_p10 }
  0x48   :  { %172 = vrot.lane.b32.xlu1 %v918_v1, %s839_s26  ;;  %170 = vrot.lane.b32.xlu0 %v911_v0, %s839_s26 }
  0x4c   :  { %226 = vrot.lane.b32.xlu1 %v918_v1, %s840_s27  ;;  %224 = vrot.lane.b32.xlu0 %v911_v0, %s840_s27 }
  0x50   :  { %202 = vrot.lane.b32.xlu1 %v918_v1, %s841_s28  ;;  %200 = vrot.lane.b32.xlu0 %v911_v0, %s841_s28 }
  0x54   :  { %404 = vrot.lane.b32.xlu1 %v937_v3, %s836_s24  ;;  %402 = vrot.lane.b32.xlu0 %v931_v2, %s836_s24 }
  0x58   :  { %454 = vrot.lane.b32.xlu1 %v937_v3, %s835_s23  ;;  %452 = vrot.lane.b32.xlu0 %v931_v2, %s835_s23 }
  0x5c   :  { %382 = vrot.lane.b32.xlu1 %v937_v3, %s837_s2  ;;  %380 = vrot.lane.b32.xlu0 %v931_v2, %s837_s2 }
  0x60   :  { %432 = vrot.lane.b32.xlu1 %v937_v3, %s838_s25  ;;  %430 = vrot.lane.b32.xlu0 %v931_v2, %s838_s25 }
  0x64   :  { %256 = vrot.lane.b32.xlu1 %v918_v1, %s842_s29  ;;  %254 = vrot.lane.b32.xlu0 %v911_v0, %s842_s29 }
  0x68   :  { %484 = vrot.lane.b32.xlu1 %v937_v3, %s839_s26  ;;  %482 = vrot.lane.b32.xlu0 %v931_v2, %s839_s26 }
  0x6c   :  { %534 = vrot.lane.b32.xlu1 %v937_v3, %s840_s27  ;;  %532 = vrot.lane.b32.xlu0 %v931_v2, %s840_s27 }
  0x70   :  { %512 = vrot.lane.b32.xlu1 %v937_v3, %s841_s28  ;;  %510 = vrot.lane.b32.xlu0 %v931_v2, %s841_s28 }
  0x74   :  { %562 = vrot.lane.b32.xlu1 %v937_v3, %s842_s29  ;;  %560 = vrot.lane.b32.xlu0 %v931_v2, %s842_s29 }
  0xaa   :  { %v139_v11 = vpop.permute.xlu1 %138  ;;  %v85_v12 = vpop.permute.xlu0 %84 }
  0xae   :  { %v60_v17 = vpop.permute.xlu0 %59  ;;  %v141_v18 = vpop.permute.xlu1 %140 }
  0xaf   :  { %v143_v19 = vsel %vm142_vm0, %v139_v11, %v141_v18  ;;  %v144_v20 = vsel %vm142_vm0, %v141_v18, %v139_v11 }
  0xb0   :  { %v158_v24 = vmul.f32 %v151_v13, %v144_v20  ;;  %v159_v25 = vmul.f32 %v155_v14, %v143_v19  ;;  %v213_v14 = vrot.slane %v208_v62, %v959_v8 }
  0xb2   :  { %v162_v28 = vrot.slane %v158_v24, 4  ;;  %v163_v29 = vrot.slane %v159_v25, 4  ;;  %v62_v30 = vpop.permute.xlu1 %61  ;;  %v87_v31 = vpop.permute.xlu0 %86 }
  0xb3   :  { %v66_v34 = vsel %vm65_vm1, %v60_v17, %v62_v30  ;;  %v67_v35 = vsel %vm65_vm1, %v62_v30, %v60_v17  ;;  %v89_v36 = vsel %vm88_vm2, %v85_v12, %v87_v31  ;;  %v90_v37 = vsel %vm88_vm2, %v87_v31, %v85_v12  ;;  %v408_v17 = vld [vmem:[#allocation8 + $0x2] sm:$0x3] }
  0xb4   :  { %166 = vst [vmem:[#allocation2 + $0x10] sm:$0xf0] %v162_v28  ;;  %167 = vst [vmem:[#allocation2 + $0x18] sm:$0xf0] %v163_v29  ;;  %v80_v38 = vmul.f32 %v73_v21, %v67_v35  ;;  %v81_v39 = vmul.f32 %v77_v22, %v66_v34  ;;  %v104_v40 = vmul.f32 %v97_v26, %v90_v37 }
  0xb5   :  { %v105_v41 = vmul.f32 %v101_v27, %v89_v36  ;;  %v413_v31 = vrot.slane %v408_v17, %v959_v8 }
  0xb6   :  { %82 = vst [vmem:[#allocation2] sm:$0xf] %v80_v38  ;;  %83 = vst [vmem:[#allocation2 + $0x8] sm:$0xf] %v81_v39  ;;  %v108_v43 = vrot.slane %v104_v40, 4  ;;  %v117_v45 = vpop.permute.xlu1 %116  ;;  %v115_v46 = vpop.permute.xlu0 %114 }
  0xb7   :  { %v109_v44 = vrot.slane %v105_v41, 4  ;;  %v119_v47 = vsel %vm118_vm3, %v115_v46, %v117_v45  ;;  %v120_v48 = vsel %vm118_vm3, %v117_v45, %v115_v46 }
  0xb8   :  { %112 = vst [vmem:[#allocation2] sm:$0xf0] %v108_v43  ;;  %v134_v49 = vmul.f32 %v127_v32, %v120_v48  ;;  %v135_v50 = vmul.f32 %v131_v33, %v119_v47  ;;  %v417_v32 = vrot.slane %v408_v17, %v961_v9  ;;  %v458_v33 = vld [vmem:[#allocation8 + $0x6] sm:$0x3] }
  0xb9   :  { %113 = vst [vmem:[#allocation2 + $0x8] sm:$0xf0] %v109_v44  ;;  %v463_v42 = vrot.slane %v458_v33, %v959_v8  ;;  %v467_v43 = vrot.slane %v458_v33, %v961_v9  ;;  %v386_v44 = vld [vmem:[#allocation8] sm:$0x3] }
  0xba   :  { %136 = vst [vmem:[#allocation2 + $0x10] sm:$0xf] %v134_v49  ;;  %137 = vst [vmem:[#allocation2 + $0x18] sm:$0xf] %v135_v50  ;;  %v173_v54 = vpop.permute.xlu1 %172  ;;  %v171_v55 = vpop.permute.xlu0 %170  ;;  %v391_v53 = vrot.slane %v386_v44, %v959_v8 }
  0xbb   :  { %v175_v56 = vsel %vm174_vm4, %v171_v55, %v173_v54  ;;  %v176_v57 = vsel %vm174_vm4, %v173_v54, %v171_v55  ;;  %v395_v54 = vrot.slane %v386_v44, %v961_v9 }
  0xbc   :  { %v190_v58 = vmul.f32 %v183_v51, %v175_v56  ;;  %v191_v59 = vmul.f32 %v187_v52, %v176_v57  ;;  %v436_v57 = vld [vmem:[#allocation8 + $0x4] sm:$0x3] }
  0xbe   :  { %v194_v63 = vrot.slane %v190_v58, 4  ;;  %v195_v4 = vrot.slane %v191_v59, 4  ;;  %v227_v5 = vpop.permute.xlu1 %226  ;;  %v225_v6 = vpop.permute.xlu0 %224 }
  0xbf   :  { %v229_v10 = vsel %vm228_vm5, %v225_v6, %v227_v5  ;;  %v230_v11 = vsel %vm228_vm5, %v227_v5, %v225_v6  ;;  %v278_v19 = vld [vmem:[#allocation2] sm:$0xff] }
  0xc0   :  { %198 = vst [vmem:[#allocation2 + $0x20] sm:$0xf0] %v194_v63  ;;  %199 = vst [vmem:[#allocation2 + $0x28] sm:$0xf0] %v195_v4  ;;  %v244_v12 = vmul.f32 %v237_v60, %v229_v10  ;;  %v245_v13 = vmul.f32 %v241_v61, %v230_v11  ;;  %v279_v16 = vld [vmem:[#allocation2 + $0x8] sm:$0xff]  ;;  %v441_v11 = vrot.slane %v436_v57, %v959_v8 }
  0xc1   :  { %v281_v18 = vld [vmem:[#allocation2 + $0x18] sm:$0xff]  ;;  %v280_v20 = vld [vmem:[#allocation2 + $0x10] sm:$0xff] }
  0xc2   :  { %v248_v21 = vrot.slane %v244_v12, 4  ;;  %v249_v22 = vrot.slane %v245_v13, 4  ;;  %v203_v23 = vpop.permute.xlu1 %202  ;;  %v201_v24 = vpop.permute.xlu0 %200  ;;  %v699_v25 = vpack.c.bf16 %v281_v18, %v279_v16  ;;  %v701_v26 = vpack.c.bf16 %v280_v20, %v278_v19  ;;  %v262_v13 = vld [vmem:[#allocation8 + $0x10] sm:$0x3] }
  0xc3   :  { %v205_v27 = vsel %vm204_vm6, %v201_v24, %v203_v23  ;;  %v206_v28 = vsel %vm204_vm6, %v203_v23, %v201_v24  ;;  %v445_v12 = vrot.slane %v436_v57, %v961_v9  ;;  %v267_v20 = vrot.slane %v262_v13, %v959_v8  ;;  %v566_v57 = vld [vmem:[#allocation8 + $0x10] sm:$0x3] }
  0xc4   :  { %252 = vst [vmem:[#allocation2 + $0x30] sm:$0xf0] %v248_v21  ;;  %253 = vst [vmem:[#allocation2 + $0x38] sm:$0xf0] %v249_v22  ;;  %v220_v29 = vmul.f32 %v213_v14, %v205_v27  ;;  %v221_v30 = vmul.f32 %v217_v15, %v206_v28  ;;  %700 = vmatprep.subr.bf16.mxu0 %v699_v25  ;;  %v271_v21 = vrot.slane %v262_v13, %v961_v9  ;;  %v488_v22 = vld [vmem:[#allocation8 + $0xa] sm:$0x3] }
  0xc5   :  { %702 = vmatpush1.bf16.msra.mxu0 %v701_v26  ;;  %v575_v13 = vrot.slane %v566_v57, %v961_v9 }
  0xc6   :  { %222 = vst [vmem:[#allocation2 + $0x30] sm:$0xf] %v220_v29  ;;  %223 = vst [vmem:[#allocation2 + $0x38] sm:$0xf] %v221_v30  ;;  %v405_v34 = vpop.permute.xlu1 %404  ;;  %v403_v35 = vpop.permute.xlu0 %402  ;;  %v493_v29 = vrot.slane %v488_v22, %v959_v8  ;;  %v497_v30 = vrot.slane %v488_v22, %v961_v9 }
  0xc7   :  { %v406_v36 = vsel %vm88_vm2, %v403_v35, %v405_v34  ;;  %v407_v37 = vsel %vm88_vm2, %v405_v34, %v403_v35  ;;  %v283_v38 = vld [vmem:[#allocation2 + $0x28] sm:$0xff]  ;;  %v282_v39 = vld [vmem:[#allocation2 + $0x20] sm:$0xff] }
  0xc8   :  { %v420_v40 = vmul.f32 %v413_v31, %v407_v37  ;;  %v421_v41 = vmul.f32 %v417_v32, %v406_v36  ;;  %481 = vst [vmem:[#allocation2 + $0x28] sm:$0xf] %v937_v3  ;;  %480 = vst [vmem:[#allocation2 + $0x20] sm:$0xf] %v931_v2  ;;  %v538_v31 = vld [vmem:[#allocation8 + $0xe] sm:$0x3] }
  0xca   :  { %v424_v45 = vrot.slane %v420_v40, 4  ;;  %v425_v46 = vrot.slane %v421_v41, 4  ;;  %v455_v47 = vpop.permute.xlu1 %454  ;;  %v453_v48 = vpop.permute.xlu0 %452  ;;  %v516_v41 = vld [vmem:[#allocation8 + $0xc] sm:$0x3] }
  0xcb   :  { %v456_v49 = vsel %vm142_vm0, %v453_v48, %v455_v47  ;;  %v457_v50 = vsel %vm142_vm0, %v455_v47, %v453_v48 }
  0xcc   :  { %428 = vst [vmem:[#allocation2] sm:$0xf0] %v424_v45  ;;  %429 = vst [vmem:[#allocation2 + $0x8] sm:$0xf0] %v425_v46  ;;  %v470_v51 = vmul.f32 %v463_v42, %v457_v50  ;;  %v471_v52 = vmul.f32 %v467_v43, %v456_v49 }
  0xcd   :  { %v285_v55 = vld [vmem:[#allocation2 + $0x38] sm:$0xff]  ;;  %v284_v56 = vld [vmem:[#allocation2 + $0x30] sm:$0xff] }
  0xce   :  { %v474_v58 = vrot.slane %v470_v51, 4  ;;  %v475_v59 = vrot.slane %v471_v52, 4  ;;  %v383_v60 = vpop.permute.xlu1 %382  ;;  %v381_v61 = vpop.permute.xlu0 %380  ;;  %v703_v62 = vpack.c.bf16 %v285_v55, %v283_v38  ;;  %v705_v63 = vpack.c.bf16 %v284_v56, %v282_v39 }
  0xcf   :  { %v384_v4 = vsel %vm65_vm1, %v381_v61, %v383_v60  ;;  %v385_v5 = vsel %vm65_vm1, %v383_v60, %v381_v61  ;;  %v543_v38 = vrot.slane %v538_v31, %v959_v8  ;;  %v547_v39 = vrot.slane %v538_v31, %v961_v9 }
  0xd0   :  { %478 = vst [vmem:[#allocation2 + $0x10] sm:$0xf0] %v474_v58  ;;  %479 = vst [vmem:[#allocation2 + $0x18] sm:$0xf0] %v475_v59  ;;  %v398_v6 = vmul.f32 %v391_v53, %v385_v5  ;;  %v399_v10 = vmul.f32 %v395_v54, %v384_v4  ;;  %704 = vmatprep.subr.bf16.mxu0 %v703_v62  ;;  %v521_v55 = vrot.slane %v516_v41, %v959_v8  ;;  %v54_v58 = vld [vmem:[#allocation6] sm:$0xf] }
  0xd1   :  { %706 = vmatpush1.bf16.msra.mxu0 %v705_v63  ;;  %v525_v56 = vrot.slane %v516_v41, %v961_v9 }
  0xd2   :  { %400 = vst [vmem:[#allocation2] sm:$0xf] %v398_v6  ;;  %401 = vst [vmem:[#allocation2 + $0x8] sm:$0xf] %v399_v10  ;;  %v433_v14 = vpop.permute.xlu1 %432  ;;  %v431_v15 = vpop.permute.xlu0 %430 }
  0xd3   :  { %v434_v16 = vsel %vm118_vm3, %v431_v15, %v433_v14  ;;  %v435_v17 = vsel %vm118_vm3, %v433_v14, %v431_v15 }
  0xd4   :  { %v448_v18 = vmul.f32 %v441_v11, %v435_v17  ;;  %v449_v19 = vmul.f32 %v445_v12, %v434_v16  ;;  %v571_v12 = vrot.slane %v566_v57, %v959_v8 }
  0xd6   :  { %450 = vst [vmem:[#allocation2 + $0x10] sm:$0xf] %v448_v18  ;;  %451 = vst [vmem:[#allocation2 + $0x18] sm:$0xf] %v449_v19  ;;  %v257_v23 = vpop.permute.xlu1 %256  ;;  %v255_v24 = vpop.permute.xlu0 %254 }
  0xd7   :  { %v259_v25 = vsel %vm258_vm7, %v255_v24, %v257_v23  ;;  %v260_v26 = vsel %vm258_vm7, %v257_v23, %v255_v24 }
  0xd8   :  { %v274_v27 = vmul.f32 %v267_v20, %v259_v25  ;;  %v275_v28 = vmul.f32 %v271_v21, %v260_v26 }
  0xd9   :  { %v583_v40 = vld [vmem:[#allocation2 + $0x8] sm:$0xff]  ;;  %v582_v43 = vld [vmem:[#allocation2] sm:$0xff] }
  0xda   :  { %276 = vst [vmem:[#allocation2 + $0x40] sm:$0xf] %v274_v27  ;;  %277 = vst [vmem:[#allocation2 + $0x48] sm:$0xf] %v275_v28  ;;  %v485_v32 = vpop.permute.xlu1 %484  ;;  %v483_v33 = vpop.permute.xlu0 %482 }
  0xdb   :  { %v486_v34 = vsel %vm174_vm4, %v483_v33, %v485_v32  ;;  %v487_v35 = vsel %vm174_vm4, %v485_v32, %v483_v33 }
  0xdc   :  { %v500_v36 = vmul.f32 %v493_v29, %v486_v34  ;;  %v501_v37 = vmul.f32 %v497_v30, %v487_v35 }
  0xdd   :  { %v585_v42 = vld [vmem:[#allocation2 + $0x18] sm:$0xff]  ;;  %v584_v44 = vld [vmem:[#allocation2 + $0x10] sm:$0xff] }
  0xde   :  { %v504_v45 = vrot.slane %v500_v36, 4  ;;  %v505_v46 = vrot.slane %v501_v37, 4  ;;  %v535_v47 = vpop.permute.xlu1 %534  ;;  %v533_v48 = vpop.permute.xlu0 %532  ;;  %v707_v49 = vpack.c.bf16 %v585_v42, %v583_v40  ;;  %v709_v50 = vpack.c.bf16 %v584_v44, %v582_v43 }
  0xdf   :  { %v536_v51 = vsel %vm228_vm5, %v533_v48, %v535_v47  ;;  %v537_v52 = vsel %vm228_vm5, %v535_v47, %v533_v48 }
  0xe0   :  { %508 = vst [vmem:[#allocation2 + $0x20] sm:$0xf0] %v504_v45  ;;  %509 = vst [vmem:[#allocation2 + $0x28] sm:$0xf0] %v505_v46  ;;  %v550_v53 = vmul.f32 %v543_v38, %v536_v51  ;;  %v551_v54 = vmul.f32 %v547_v39, %v537_v52  ;;  %708 = vmatprep.subr.bf16.mxu1 %v707_v49 }
  0xe1   :  { %710 = vmatpush1.bf16.msra.mxu1 %v709_v50  ;;  %v287_v59 = vld [vmem:[#allocation2 + $0x48] sm:$0xf]  ;;  %v286_v60 = vld [vmem:[#allocation2 + $0x40] sm:$0xf] }
  0xe2   :  { %v554_v61 = vrot.slane %v550_v53, 4  ;;  %v555_v62 = vrot.slane %v551_v54, 4  ;;  %v513_v63 = vpop.permute.xlu1 %512  ;;  %v511_v4 = vpop.permute.xlu0 %510  ;;  %693 = vmatprep.subr.msk.mxu0 %vm292_vm8, %v287_v59 }
  0xe3   :  { %v514_v5 = vsel %vm204_vm6, %v511_v4, %v513_v63  ;;  %v515_v6 = vsel %vm204_vm6, %v513_v63, %v511_v4  ;;  %694 = vmatpush1.msk.msra.mxu0 %vm292_vm8, %v286_v60 }
  0xe4   :  { %558 = vst [vmem:[#allocation2 + $0x30] sm:$0xf0] %v554_v61  ;;  %559 = vst [vmem:[#allocation2 + $0x38] sm:$0xf0] %v555_v62  ;;  %v528_v10 = vmul.f32 %v521_v55, %v514_v5  ;;  %v529_v11 = vmul.f32 %v525_v56, %v515_v6  ;;  %695 = vmatmul.mubr.msk.f32.vlgmr.msra.gmra.mrb[0].mxu0 %vm288_vm9, %v54_v58 }
  0xe6   :  { %530 = vst [vmem:[#allocation2 + $0x30] sm:$0xf] %v528_v10  ;;  %531 = vst [vmem:[#allocation2 + $0x38] sm:$0xf] %v529_v11  ;;  %v563_v14 = vpop.permute.xlu1 %562  ;;  %v561_v15 = vpop.permute.xlu0 %560 }
  0xe7   :  { %v564_v16 = vsel %vm258_vm7, %v561_v15, %v563_v14  ;;  %v565_v17 = vsel %vm258_vm7, %v563_v14, %v561_v15  ;;  %v587_v20 = vld [vmem:[#allocation2 + $0x28] sm:$0xff]  ;;  %v586_v21 = vld [vmem:[#allocation2 + $0x20] sm:$0xff] }
  0xe8   :  { %v578_v18 = vmul.f32 %v571_v12, %v564_v16  ;;  %v579_v19 = vmul.f32 %v575_v13, %v565_v17 }
  0xea   :  { %580 = vst [vmem:[#allocation2 + $0x40] sm:$0xf] %v578_v18  ;;  %581 = vst [vmem:[#allocation2 + $0x48] sm:$0xf] %v579_v19 }
  0xed   :  { %v589_v8 = vld [vmem:[#allocation2 + $0x38] sm:$0xff]  ;;  %v588_v9 = vld [vmem:[#allocation2 + $0x30] sm:$0xff] }
  0xee   :  { %v711_v22 = vpack.c.bf16 %v589_v8, %v587_v20  ;;  %v713_v23 = vpack.c.bf16 %v588_v9, %v586_v21 }
  0xf0   :  { %712 = vmatprep.subr.bf16.mxu1 %v711_v22 }
  0xf1   :  { %714 = vmatpush1.bf16.msra.mxu1 %v713_v23  ;;  %v591_v24 = vld [vmem:[#allocation2 + $0x48] sm:$0xf]  ;;  %v590_v25 = vld [vmem:[#allocation2 + $0x40] sm:$0xf] }
  0xf2   :  { %696 = vmatprep.subr.msk.mxu1 %vm292_vm8, %v591_v24 }
  0xf5   :  { %697 = vmatpush1.msk.msra.mxu1 %vm292_vm8, %v590_v25 }
  0xf6   :  { %698 = vmatmul.mubr.msk.f32.vlgmr.msra.gmra.mrb[0].mxu1 %vm288_vm9, %v54_v58 }
 0x1b7   :  { %v365_v7 = vpop.f32.mrb[0].mxu0 }
 0x1b8   :  { %v366_v26 = vadd.f32 %v365_v7, %v911_v0  ;;  %v367_v27 = vpop.f32.mrb[1].mxu0 }
 0x1b9   :  { %v368_v28 = vadd.f32 %v367_v27, %v918_v1 }
 0x1bb   :  { %v372_v29 = vcombine.low %v366_v26, %v368_v28 }
 0x1bd   :  { %374 = vst [vmem:[#allocation9] sm:$0xff] %v372_v29 }
 0x1c9   :  { %v664_v30 = vpop.f32.mrb[0].mxu1 }
 0x1ca   :  { %v665_v31 = vadd.f32 %v664_v30, %v931_v2  ;;  %v666_v32 = vpop.f32.mrb[1].mxu1 }
 0x1cb   :  { %v667_v33 = vadd.f32 %v666_v32, %v937_v3 }
 0x1cd   :  { %v671_v34 = vcombine.low %v665_v31, %v667_v33 }
 0x1cf   :  { %674 = vst [vmem:[#allocation9 + $0x8] sm:$0xff] %v671_v34 }
 0x1d0   :  { %811 = shalt.err (!%p808_p0)
}
 0x1d1   :  { %s812_s9 = scalar_lea.hbm %s1097_s3, 256 }
 0x1d2   :  { %p813_p1 = scmp.ne.s32.totalorder %s1097_s3, %s812_s9  ;;  %p816_p2 = scmp.lt.u32.totalorder %s812_s9, %s1097_s3 }
 0x1d4   :  { %p818_p3 = pnand %p816_p2, %p813_p1 }
 0x1d6   :  { %821 = shalt.err (!%p818_p3)
}
 0x1d7   :  { %686 = dma.vmem_to_hbm [thread:$0]  %s681_s4, 256, %s1097_s3, [#allocation5], %s830_s1, %s830_s1, %s831_s7  }
 0x1d8   :  { %826 = dma.done.wait [#allocation5], 256  }
 0x1d9   :  { %827 = vsyncadd [#allocation5], 4294967040 }
 0x1da   :  { %690 = vsyncpa [#allocation4], 1 }
 0x1db   :  { %691 = vsyncpa [#allocation7], 1 }
 0x1dc   :  { %692 = vsyncpa [#allocation5], 1 }

</bundles_post_ra>
